<compile_context>
chip_gen: v7x
topology: tpu7x:2x2x1
jax: 0.10.0
libtpu: 0.0.40
codegen_flags: <defaults>
</compile_context>

<pallas_src>
import jax
import jax.numpy as jnp
from jax.experimental import pallas as pl
from jax.experimental.pallas import tpu as pltpu


def _round_up(v, m):
    return ((v + m - 1) // m) * m


def block_kernel(bd_ref, x_ref, mask_ref, invd_ref,
                 w1_ref, b1_ref, w2_ref, b2_ref, wl_ref, bl_ref,
                 out_ref):
    """One batch tile (Bt graphs, R = Bt*N collapsed rows) per grid step.

    bd_ref   : (R, R)      bf16  block-diagonal adjacency, self-loops folded in
    x_ref    : (R, Cin)    bf16  node features (rows = graphs x nodes)
    mask_ref : (R, 1)      f32   node mask (1.0 = keep)
    invd_ref : (R, 1)      f32   1 / clamp(deg, 1), exact (host-side f32)
    w1_ref   : (Cin, 2*Hp) bf16  [W1_rel | W1_root], each half padded to Hp
    w2_ref   : (Hp, 2*Cp)  bf16  [W2_rel | W2_root], each half padded to Cp
    wl_ref   : (Hp+Cp, Cp) bf16  packed JK-cat linear weight
    """
    Hp = w1_ref.shape[1] // 2
    Cp = w2_ref.shape[1] // 2

    bd = bd_ref[...]                      # (R, R) bf16 block-diag adjacency
    inv_deg = invd_ref[...]               # (R, 1) f32
    m = mask_ref[...]                     # (R, 1) f32

    # ---- conv1 (reassociated: project first, aggregate the rel half) ----
    h1 = jnp.dot(x_ref[...], w1_ref[...],
                 preferred_element_type=jnp.float32)              # (R, 2*Hp)
    agg1 = jnp.dot(bd, h1[:, :Hp].astype(jnp.bfloat16),
                   preferred_element_type=jnp.float32)            # (R, Hp)
    x1 = jnp.maximum((agg1 * inv_deg + h1[:, Hp:] + b1_ref[...]) * m, 0.0)
    x1_bf = x1.astype(jnp.bfloat16)

    # ---- conv2 (same structure) ----
    h2 = jnp.dot(x1_bf, w2_ref[...],
                 preferred_element_type=jnp.float32)              # (R, 2*Cp)
    agg2 = jnp.dot(bd, h2[:, :Cp].astype(jnp.bfloat16),
                   preferred_element_type=jnp.float32)            # (R, Cp)
    x2 = jnp.maximum((agg2 * inv_deg + h2[:, Cp:] + b2_ref[...]) * m, 0.0)

    # ---- JumpingKnowledge('cat') + final Linear, fused into one matmul ----
    cat = jnp.concatenate([x1_bf, x2.astype(jnp.bfloat16)], axis=-1)
    y = jnp.dot(cat, wl_ref[...],
                preferred_element_type=jnp.float32) + bl_ref[...]
    out_ref[...] = y.astype(out_ref.dtype)


def block_forward(x, adj, mask, params, *, batch_tile=None,
                  out_dtype=jnp.bfloat16):
    """x: (B,N,Cin) f32, adj: (B,N,N) f32, mask: (B,N,1) f32, params: dict."""
    B, N, Cin = x.shape
    H = params["w1_rel"].shape[1]
    Cout = params["w2_rel"].shape[1]
    Hp = _round_up(H, 128)            # lane-dense hidden width
    Cp = _round_up(Cout, 128)         # lane-dense output width

    # Batch tile: ~256 collapsed rows fills the MXU row dimension (v6e/v7x);
    # keep >= 2 grid steps so both v7x TensorCores get work.
    if batch_tile is None:
        batch_tile = max(1, min(B, 256 // max(N, 1)))
        if B >= 2 and -(-B // batch_tile) < 2:
            batch_tile = -(-B // 2)
    Bt = max(1, min(batch_tile, B))
    steps = -(-B // Bt)
    B_pad = steps * Bt
    R = Bt * N
    assert steps == 1 or R % 8 == 0, "Bt*N must be a multiple of 8"
    # TODO(synk): for large N, row-tile the (R,R) block instead of asserting.

    # pad batch to a multiple of the batch tile (zeros; sliced off below)
    if B_pad != B:
        pb = B_pad - B
        x = jnp.pad(x, ((0, pb), (0, 0), (0, 0)))
        adj = jnp.pad(adj, ((0, pb), (0, 0), (0, 0)))
        mask = jnp.pad(mask, ((0, pb), (0, 0), (0, 0)))

    # ---- host-side packing (pure O(B*N^2) data prep) ----
    adj = adj.astype(jnp.float32)
    eye_n = jnp.eye(N, dtype=jnp.bool_)
    adj_sl = jnp.where(eye_n[None], 1.0, adj)                 # diag set to 1
    deg = jnp.clip(jnp.sum(adj_sl, axis=-1, keepdims=True), 1.0, None)
    inv_deg = (1.0 / deg).reshape(B_pad * N, 1).astype(jnp.float32)

    # block-diagonal adjacency, bf16 (exact for 0/1 adjacency).
    # TODO(synk): pooled (real-valued) adjacency loses ~1e-3 rel in bf16.
    a4 = adj_sl.reshape(steps, Bt, N, N).astype(jnp.bfloat16)
    eye_bt = jnp.eye(Bt, dtype=jnp.bfloat16)
    bd = a4[:, :, :, None, :] * eye_bt[None, :, None, :, None]
    bd = bd.reshape(steps * R, R)                              # (steps*R, R)

    x2d = x.astype(jnp.bfloat16).reshape(B_pad * N, Cin)
    m2d = mask.astype(jnp.float32).reshape(B_pad * N, 1)

    def pad2(w, rows, cols):
        return jnp.pad(w, ((0, rows - w.shape[0]), (0, cols - w.shape[1])))

    # column-packed [W_rel | W_root] per conv (lane-dense halves), and the
    # row-packed JK-cat linear weight; zero-padding keeps math exact.
    w1 = jnp.concatenate([pad2(params["w1_rel"], Cin, Hp),
                          pad2(params["w1_root"], Cin, Hp)],
                         axis=1).astype(jnp.bfloat16)          # (Cin, 2Hp)
    b1 = pad2(params["b1"], 1, Hp).astype(jnp.float32)         # (1, Hp)
    w2 = jnp.concatenate([pad2(params["w2_rel"], Hp, Cp),
                          pad2(params["w2_root"], Hp, Cp)],
                         axis=1).astype(jnp.bfloat16)          # (Hp, 2Cp)
    b2 = pad2(params["b2"], 1, Cp).astype(jnp.float32)         # (1, Cp)
    wl = jnp.concatenate([pad2(params["w_lin"][:H], Hp, Cp),
                          pad2(params["w_lin"][H:], Cp, Cp)],
                         axis=0).astype(jnp.bfloat16)          # (Hp+Cp, Cp)
    bl = pad2(params["b_lin"], 1, Cp).astype(jnp.float32)      # (1, Cp)

    # VMEM budget: per-step footprint (double-buffered streams + resident
    # weights + live f32 intermediates) with margin, clamped <= 48 MiB so it
    # is valid on v7x (64 MiB physical per TC).
    out_b = jnp.dtype(out_dtype).itemsize
    stream = R * R * 2 + R * Cin * 2 + R * 8 + R * Cp * out_b
    wts = (Cin * 2 * Hp + Hp * 2 * Cp + (Hp + Cp) * Cp) * 2 + (Hp + 2 * Cp) * 4
    inter = R * (4 * Hp + 5 * Cp) * 4
    vmem_limit = int(min(max(3 * (2 * stream + wts + inter), 8 << 20), 48 << 20))

    grid_spec = pltpu.PrefetchScalarGridSpec(
        num_scalar_prefetch=0,
        grid=(steps,),
        in_specs=[
            pl.BlockSpec((R, R), lambda s: (s, 0)),            # block-diag adj
            pl.BlockSpec((R, Cin), lambda s: (s, 0)),           # x rows
            pl.BlockSpec((R, 1), lambda s: (s, 0)),             # mask
            pl.BlockSpec((R, 1), lambda s: (s, 0)),             # 1/deg
            pl.BlockSpec((Cin, 2 * Hp), lambda s: (0, 0)),      # packed W1
            pl.BlockSpec((1, Hp), lambda s: (0, 0)),            # b1
            pl.BlockSpec((Hp, 2 * Cp), lambda s: (0, 0)),       # packed W2
            pl.BlockSpec((1, Cp), lambda s: (0, 0)),            # b2
            pl.BlockSpec((Hp + Cp, Cp), lambda s: (0, 0)),      # packed W_lin
            pl.BlockSpec((1, Cp), lambda s: (0, 0)),            # b_lin
        ],
        out_specs=pl.BlockSpec((R, Cp), lambda s: (s, 0)),
    )

    out = pl.pallas_call(
        block_kernel,
        out_shape=jax.ShapeDtypeStruct((steps * R, Cp), out_dtype),
        grid_spec=grid_spec,
        compiler_params=pltpu.CompilerParams(
            dimension_semantics=("parallel",),
            vmem_limit_bytes=vmem_limit),
    )(bd, x2d, m2d, inv_deg, w1, b1, w2, b2, wl, bl)

    # TODO(synk): benchmark an unpadded (Bt, N*Cout) lane-dense store vs this
    # padded Cp-wide bf16 store to cut the remaining write amplification.
    return out.reshape(B_pad, N, Cp)[:B, :, :Cout]


def block_reference(x, adj, mask, params):
    """Pure-JAX f32 reference mirroring the PyTorch forward."""
    B, N, _ = adj.shape
    eye = jnp.eye(N, dtype=adj.dtype)[None]
    adj = jnp.where(eye > 0, 1.0, adj)
    deg = jnp.clip(jnp.sum(adj, axis=-1, keepdims=True), 1.0, None)

    def conv(xin, w_rel, w_root, b):
        agg = jnp.einsum("bij,bjc->bic", adj, xin) / deg
        out = agg @ w_rel + xin @ w_root + b
        return out * mask

    x1 = jax.nn.relu(conv(x, params["w1_rel"], params["w1_root"], params["b1"]))
    x2 = jax.nn.relu(conv(x1, params["w2_rel"], params["w2_root"], params["b2"]))
    cat = jnp.concatenate([x1, x2], axis=-1)
    return cat @ params["w_lin"] + params["b_lin"]


def init_params(key, in_channels, hidden_channels, out_channels):
    ks = jax.random.split(key, 8)

    def glorot(k, shape):
        fan_in, fan_out = shape
        lim = (6.0 / (fan_in + fan_out)) ** 0.5
        return jax.random.uniform(k, shape, jnp.float32, -lim, lim)

    return {
        "w1_rel":  glorot(ks[0], (in_channels, hidden_channels)),
        "w1_root": glorot(ks[1], (in_channels, hidden_channels)),
        "b1":      jnp.zeros((1, hidden_channels), jnp.float32),
        "w2_rel":  glorot(ks[2], (hidden_channels, out_channels)),
        "w2_root": glorot(ks[3], (hidden_channels, out_channels)),
        "b2":      jnp.zeros((1, out_channels), jnp.float32),
        "w_lin":   glorot(ks[4], (hidden_channels + out_channels, out_channels)),
        "b_lin":   jax.random.uniform(ks[5], (1, out_channels), jnp.float32,
                                      -0.1, 0.1),
    }


if __name__ == "__main__":
    B, N = 4, 16
    C_IN, HIDDEN, C_OUT = 8, 32, 32

    key = jax.random.PRNGKey(0)
    kx, kadj, kp = jax.random.split(key, 3)

    x = jax.random.normal(kx, (B, N, C_IN), jnp.float32)
    # symmetric 0/1 adjacency
    a = (jax.random.uniform(kadj, (B, N, N)) > 0.7).astype(jnp.float32)
    adj = jnp.maximum(a, jnp.transpose(a, (0, 2, 1)))
    mask = jnp.ones((B, N, 1), jnp.float32)   # equivalent to mask=None

    params = init_params(kp, C_IN, HIDDEN, C_OUT)

    out = block_forward(x, adj, mask, params)
    out = jax.block_until_ready(out)

    ref = block_reference(x, adj, mask, params)
    assert out.shape == (B, N, C_OUT)
    err = float(jnp.max(jnp.abs(out.astype(jnp.float32) - ref)))
    # bf16 MXU operands + bf16 output store (f32 accumulation) -> loose tol
    assert err < 1e-1, f"max abs err {err}"

    print("KERNEL_OK")
</pallas_src>

<mosaic_0001>
module attributes {stable_mosaic.version = 11 : i64} {
  func.func @block_kernel(%arg0: i32, %arg1: memref<32x32xbf16, #tpu.memory_space<vmem>>, %arg2: memref<32x8xbf16, #tpu.memory_space<vmem>>, %arg3: memref<32x1xf32, #tpu.memory_space<vmem>>, %arg4: memref<32x1xf32, #tpu.memory_space<vmem>>, %arg5: memref<8x256xbf16, #tpu.memory_space<vmem>>, %arg6: memref<1x128xf32, #tpu.memory_space<vmem>>, %arg7: memref<128x256xbf16, #tpu.memory_space<vmem>>, %arg8: memref<1x128xf32, #tpu.memory_space<vmem>>, %arg9: memref<256x128xbf16, #tpu.memory_space<vmem>>, %arg10: memref<1x128xf32, #tpu.memory_space<vmem>>, %arg11: memref<32x128xbf16, #tpu.memory_space<vmem>>) attributes {dimension_semantics = [#tpu.dimension_semantics<parallel>], iteration_bounds = array<i64: 2>, scalar_prefetch = 0 : i64, scratch_operands = 0 : i64, tpu.core_type = #tpu.core_type<tc>, window_params = [{transform_indices = @transform_0, window_bounds = array<i64: 32, 32>}, {transform_indices = @transform_1, window_bounds = array<i64: 32, 8>}, {transform_indices = @transform_2, window_bounds = array<i64: 32, 1>}, {transform_indices = @transform_3, window_bounds = array<i64: 32, 1>}, {pipeline_mode = #tpu.pipeline_mode<synchronous>, transform_indices = @transform_4, window_bounds = array<i64: 8, 256>}, {pipeline_mode = #tpu.pipeline_mode<synchronous>, transform_indices = @transform_5, window_bounds = array<i64: 1, 128>}, {pipeline_mode = #tpu.pipeline_mode<synchronous>, transform_indices = @transform_6, window_bounds = array<i64: 128, 256>}, {pipeline_mode = #tpu.pipeline_mode<synchronous>, transform_indices = @transform_7, window_bounds = array<i64: 1, 128>}, {pipeline_mode = #tpu.pipeline_mode<synchronous>, transform_indices = @transform_8, window_bounds = array<i64: 256, 128>}, {pipeline_mode = #tpu.pipeline_mode<synchronous>, transform_indices = @transform_9, window_bounds = array<i64: 1, 128>}, {transform_indices = @transform_10, window_bounds = array<i64: 32, 128>}]} {
    %c0 = arith.constant 0 : index
    %c0_0 = arith.constant 0 : index
    %0 = vector.load %arg1[%c0, %c0_0] : memref<32x32xbf16, #tpu.memory_space<vmem>>, vector<32x32xbf16>
    %c0_1 = arith.constant 0 : index
    %c0_2 = arith.constant 0 : index
    %1 = vector.load %arg4[%c0_1, %c0_2] : memref<32x1xf32, #tpu.memory_space<vmem>>, vector<32x1xf32>
    %c0_3 = arith.constant 0 : index
    %c0_4 = arith.constant 0 : index
    %2 = vector.load %arg3[%c0_3, %c0_4] : memref<32x1xf32, #tpu.memory_space<vmem>>, vector<32x1xf32>
    %c0_5 = arith.constant 0 : index
    %c0_6 = arith.constant 0 : index
    %3 = vector.load %arg2[%c0_5, %c0_6] : memref<32x8xbf16, #tpu.memory_space<vmem>>, vector<32x8xbf16>
    %c0_7 = arith.constant 0 : index
    %c0_8 = arith.constant 0 : index
    %4 = vector.load %arg5[%c0_7, %c0_8] : memref<8x256xbf16, #tpu.memory_space<vmem>>, vector<8x256xbf16>
    %cst = arith.constant dense<0.000000e+00> : vector<32x256xf32>
    %5 = tpu.matmul %3, %4, %cst {dimension_numbers = #tpu.dot_dimension_numbers<[1], [0], [0], [1], [0, 0, 1, 1], [], []>} : vector<32x8xbf16>, vector<8x256xbf16>, vector<32x256xf32> -> vector<32x256xf32>
    %6 = vector.extract_strided_slice %5 {offsets = [0, 0], sizes = [32, 128], strides = [1, 1]} : vector<32x256xf32> to vector<32x128xf32>
    %7 = arith.truncf %6 : vector<32x128xf32> to vector<32x128xbf16>
    %cst_9 = arith.constant dense<0.000000e+00> : vector<32x128xf32>
    %8 = tpu.matmul %0, %7, %cst_9 {dimension_numbers = #tpu.dot_dimension_numbers<[1], [0], [0], [1], [0, 0, 1, 1], [], []>} : vector<32x32xbf16>, vector<32x128xbf16>, vector<32x128xf32> -> vector<32x128xf32>
    %9 = vector.broadcast %1 : vector<32x1xf32> to vector<32x128xf32>
    %10 = arith.mulf %8, %9 : vector<32x128xf32>
    %11 = vector.extract_strided_slice %5 {offsets = [0, 128], sizes = [32, 128], strides = [1, 1]} : vector<32x256xf32> to vector<32x128xf32>
    %12 = arith.addf %10, %11 : vector<32x128xf32>
    %c0_10 = arith.constant 0 : index
    %c0_11 = arith.constant 0 : index
    %13 = vector.load %arg6[%c0_10, %c0_11] : memref<1x128xf32, #tpu.memory_space<vmem>>, vector<1x128xf32>
    %14 = vector.broadcast %13 : vector<1x128xf32> to vector<32x128xf32>
    %15 = arith.addf %12, %14 : vector<32x128xf32>
    %16 = vector.broadcast %2 : vector<32x1xf32> to vector<32x128xf32>
    %17 = arith.mulf %15, %16 : vector<32x128xf32>
    %cst_12 = arith.constant 0.000000e+00 : f32
    %18 = vector.broadcast %cst_12 : f32 to vector<32x128xf32>
    %19 = arith.maximumf %17, %18 : vector<32x128xf32>
    %20 = arith.truncf %19 : vector<32x128xf32> to vector<32x128xbf16>
    %c0_13 = arith.constant 0 : index
    %c0_14 = arith.constant 0 : index
    %21 = vector.load %arg7[%c0_13, %c0_14] : memref<128x256xbf16, #tpu.memory_space<vmem>>, vector<128x256xbf16>
    %cst_15 = arith.constant dense<0.000000e+00> : vector<32x256xf32>
    %22 = tpu.matmul %20, %21, %cst_15 {dimension_numbers = #tpu.dot_dimension_numbers<[1], [0], [0], [1], [0, 0, 1, 1], [], []>} : vector<32x128xbf16>, vector<128x256xbf16>, vector<32x256xf32> -> vector<32x256xf32>
    %23 = vector.extract_strided_slice %22 {offsets = [0, 0], sizes = [32, 128], strides = [1, 1]} : vector<32x256xf32> to vector<32x128xf32>
    %24 = arith.truncf %23 : vector<32x128xf32> to vector<32x128xbf16>
    %cst_16 = arith.constant dense<0.000000e+00> : vector<32x128xf32>
    %25 = tpu.matmul %0, %24, %cst_16 {dimension_numbers = #tpu.dot_dimension_numbers<[1], [0], [0], [1], [0, 0, 1, 1], [], []>} : vector<32x32xbf16>, vector<32x128xbf16>, vector<32x128xf32> -> vector<32x128xf32>
    %26 = vector.broadcast %1 : vector<32x1xf32> to vector<32x128xf32>
    %27 = arith.mulf %25, %26 : vector<32x128xf32>
    %28 = vector.extract_strided_slice %22 {offsets = [0, 128], sizes = [32, 128], strides = [1, 1]} : vector<32x256xf32> to vector<32x128xf32>
    %29 = arith.addf %27, %28 : vector<32x128xf32>
    %c0_17 = arith.constant 0 : index
    %c0_18 = arith.constant 0 : index
    %30 = vector.load %arg8[%c0_17, %c0_18] : memref<1x128xf32, #tpu.memory_space<vmem>>, vector<1x128xf32>
    %31 = vector.broadcast %30 : vector<1x128xf32> to vector<32x128xf32>
    %32 = arith.addf %29, %31 : vector<32x128xf32>
    %33 = vector.broadcast %2 : vector<32x1xf32> to vector<32x128xf32>
    %34 = arith.mulf %32, %33 : vector<32x128xf32>
    %cst_19 = arith.constant 0.000000e+00 : f32
    %35 = vector.broadcast %cst_19 : f32 to vector<32x128xf32>
    %36 = arith.maximumf %34, %35 : vector<32x128xf32>
    %37 = arith.truncf %36 : vector<32x128xf32> to vector<32x128xbf16>
    %38 = tpu.concatenate %20, %37 in 1 : vector<32x128xbf16>, vector<32x128xbf16> -> vector<32x256xbf16>
    %c0_20 = arith.constant 0 : index
    %c0_21 = arith.constant 0 : index
    %39 = vector.load %arg9[%c0_20, %c0_21] : memref<256x128xbf16, #tpu.memory_space<vmem>>, vector<256x128xbf16>
    %cst_22 = arith.constant dense<0.000000e+00> : vector<32x128xf32>
    %40 = tpu.matmul %38, %39, %cst_22 {dimension_numbers = #tpu.dot_dimension_numbers<[1], [0], [0], [1], [0, 0, 1, 1], [], []>} : vector<32x256xbf16>, vector<256x128xbf16>, vector<32x128xf32> -> vector<32x128xf32>
    %c0_23 = arith.constant 0 : index
    %c0_24 = arith.constant 0 : index
    %41 = vector.load %arg10[%c0_23, %c0_24] : memref<1x128xf32, #tpu.memory_space<vmem>>, vector<1x128xf32>
    %42 = vector.broadcast %41 : vector<1x128xf32> to vector<32x128xf32>
    %43 = arith.addf %40, %42 : vector<32x128xf32>
    %44 = arith.truncf %43 : vector<32x128xf32> to vector<32x128xbf16>
    %c0_25 = arith.constant 0 : index
    %c0_26 = arith.constant 0 : index
    %45 = vector.load %arg11[%c0_25, %c0_26] : memref<32x128xbf16, #tpu.memory_space<vmem>>, vector<32x128xbf16>
    tpu.vector_store %arg11[%c0_25, %c0_26], %44 {strides = array<i32>} : memref<32x128xbf16, #tpu.memory_space<vmem>>, vector<32x128xbf16>,
    return
  }
  func.func @transform_0(%arg0: i32) -> (i32, i32) {
    %c0_i32 = arith.constant 0 : i32
    %c0_i32_0 = arith.constant 0 : i32
    return %arg0, %c0_i32 : i32, i32
  }
  func.func @transform_1(%arg0: i32) -> (i32, i32) {
    %c0_i32 = arith.constant 0 : i32
    %c0_i32_0 = arith.constant 0 : i32
    return %arg0, %c0_i32 : i32, i32
  }
  func.func @transform_2(%arg0: i32) -> (i32, i32) {
    %c0_i32 = arith.constant 0 : i32
    %c0_i32_0 = arith.constant 0 : i32
    return %arg0, %c0_i32 : i32, i32
  }
  func.func @transform_3(%arg0: i32) -> (i32, i32) {
    %c0_i32 = arith.constant 0 : i32
    %c0_i32_0 = arith.constant 0 : i32
    return %arg0, %c0_i32 : i32, i32
  }
  func.func @transform_4(%arg0: i32) -> (i32, i32) {
    %c0_i32 = arith.constant 0 : i32
    %c0_i32_0 = arith.constant 0 : i32
    %c0_i32_1 = arith.constant 0 : i32
    return %c0_i32, %c0_i32_0 : i32, i32
  }
  func.func @transform_5(%arg0: i32) -> (i32, i32) {
    %c0_i32 = arith.constant 0 : i32
    %c0_i32_0 = arith.constant 0 : i32
    %c0_i32_1 = arith.constant 0 : i32
    return %c0_i32, %c0_i32_0 : i32, i32
  }
  func.func @transform_6(%arg0: i32) -> (i32, i32) {
    %c0_i32 = arith.constant 0 : i32
    %c0_i32_0 = arith.constant 0 : i32
    %c0_i32_1 = arith.constant 0 : i32
    return %c0_i32, %c0_i32_0 : i32, i32
  }
  func.func @transform_7(%arg0: i32) -> (i32, i32) {
    %c0_i32 = arith.constant 0 : i32
    %c0_i32_0 = arith.constant 0 : i32
    %c0_i32_1 = arith.constant 0 : i32
    return %c0_i32, %c0_i32_0 : i32, i32
  }
  func.func @transform_8(%arg0: i32) -> (i32, i32) {
    %c0_i32 = arith.constant 0 : i32
    %c0_i32_0 = arith.constant 0 : i32
    %c0_i32_1 = arith.constant 0 : i32
    return %c0_i32, %c0_i32_0 : i32, i32
  }
  func.func @transform_9(%arg0: i32) -> (i32, i32) {
    %c0_i32 = arith.constant 0 : i32
    %c0_i32_0 = arith.constant 0 : i32
    %c0_i32_1 = arith.constant 0 : i32
    return %c0_i32, %c0_i32_0 : i32, i32
  }
  func.func @transform_10(%arg0: i32) -> (i32, i32) {
    %c0_i32 = arith.constant 0 : i32
    %c0_i32_0 = arith.constant 0 : i32
    return %arg0, %c0_i32 : i32, i32
  }
}

</mosaic_0001>

<bundles_post_ra>
// kernel: tpu_custom_call.1
= control target key start
LH: loop header
LB: loop body
LE: loop exit
PB: predicated region body
PF: predicated region fallthrough
CT: control target
= control target key end

     0   :  { %s1905_s0 = inlined_call_operand.vmem [shape: bf16[64,32], index: 0, kind: input, shape index: {}]   ;;  %s1906_s1 = inlined_call_operand.vmem [shape: bf16[64,8], index: 1, kind: input, shape index: {}]   ;;  %s1907_s2 = inlined_call_operand.vmem [shape: f32[64,1], index: 2, kind: input, shape index: {}]   ;;  %s1908_s3 = inlined_call_operand.vmem [shape: f32[64,1], index: 3, kind: input, shape index: {}]   ;;  %s1909_s4 = inlined_call_operand.vmem [shape: bf16[8,256], index: 4, kind: input, shape index: {}]   ;;  %s1910_s5 = inlined_call_operand.vmem [shape: f32[1,128], index: 5, kind: input, shape index: {}]   ;;  %s1911_s6 = inlined_call_operand.vmem [shape: bf16[128,256], index: 6, kind: input, shape index: {}]   ;;  %s1912_s7 = inlined_call_operand.vmem [shape: f32[1,128], index: 7, kind: input, shape index: {}]   ;;  %s1913_s8 = inlined_call_operand.hbm [shape: bf16[256,128], index: 8, kind: input, shape index: {}]   ;;  %s1914_s9 = inlined_call_operand.vmem [shape: f32[1,128], index: 9, kind: input, shape index: {}]   ;;  %s1915_s10 = inlined_call_operand.hbm [shape: bf16[64,128], index: 10, kind: output, shape index: {}]  }
   0x1   :  { %1919 = sst [smem:[#allocation8_spill]] %s1905_s0 }
   0x2   :  { %1920 = sst [smem:[#allocation9_spill]] %s1906_s1 }
   0x3   :  { %15 = vsyncpa [#allocation3], 0 }
   0x4   :  { %16 = vsyncpa [#allocation4], 0 }
   0x5   :  { %18 = vsyncpa [#allocation4 + $0x1], 0  ;;  %s1637_s13 = smov 0   ;;  %s1639_s14 = smov 0  }
   0x6   :  { %s1641_s15 = smov 0   ;;  %s1643_s16 = smov 0  }
   0x7 LB: > { %s1658_s17 = sadd.s32 4294967295, %s1573_s16   ;;  %s1236_s18 = sadd.s32 4294967294, %s1573_s16   ;;  %s1573_s16 = sphi %s1643_s16, %s1935_s16   ;;  %s1569_s15 = sphi %s1641_s15, %s1934_s15   ;;  %s1565_s14 = sphi %s1639_s14, %s1933_s14   ;;  %s1561_s13 = sphi %s1637_s13, %s1932_s13  }
   0x8   : > { %s1662_s19 = sadd.s32 1, %s1573_s16   ;;  %s261_s20 = sadd.s32 1, %s1569_s15 }
   0x9   : > { %s258_s21 = ssub.s32 %s1573_s16, %s1662_s19  ;;  %p271_p0 = scmp.ne.s32.totalorder %s1569_s15, %s1565_s14 }
   0xa   : > { %p259_p1 = scmp.eq.s32.totalorder %s258_s21, 0  ;;  %p272_p2 = scmp.eq.s32.totalorder %s1658_s17, 1 }
   0xb   : > { %p277_p3 = scmp.ne.s32.totalorder %s1565_s14, %s1561_s13  ;;  %p278_p4 = scmp.eq.s32.totalorder %s1236_s18, 1 }
   0xc   : > { %s1673_s22 = scalar_select %p259_p1, %s1569_s15, %s261_s20  }
   0xd   : > { %p1675_p5 = por %p272_p2, %p271_p0  ;;  %p1679_p6 = por %p278_p4, %p277_p3 }
   0xe   : > { %p1237_p7 = scmp.ge.s32.totalorder %s1573_s16, 1  ;;  %p285_p8 = scmp.lt.s32.totalorder %s1573_s16, 3 }
   0xf   : > { %s1921_s23 = scalar_select %p1675_p5, 1, 0 }
  0x10   : > { %s1922_s24 = scalar_select %p1679_p6, 1, 0 }
  0x11   : > { %p1916_p9 = scmp.eq.s32.totalorder %s1658_s17, 0  ;;  %p1686_p10 = pnand %p1237_p7, %p285_p8 }
  0x12   : > { %s1575_s26 = smov [#allocation2]   ;;  %s1479_s11 = scalar_lea.hbm %s1913_s8, 2048 }
  0x13   : > { %s1923_s25 = scalar_select %p1686_p10, 1, 0 }
  0x14   : > { %s309_s27 = sshll.u32 %s1575_s26, 4  ;;  %p1382_p11 = pneg %p1686_p10  ;;  %s310_s27 = int_to_ptr.vmem [resolvable:$true] %s309_s27 }
  0x15   : > { %p1480_p13 = scmp.ne.s32.totalorder %s1913_s8, %s1479_s11  ;;  %p1486_p3 = scmp.lt.u32.totalorder %s1479_s11, %s1913_s8 }
  0x16   : > { %p1694_p12 = pnand %p1916_p9, %p1382_p11 }
  0x18   : > { %p1481_p0 = pneg %p1694_p12 }
  0x1a   : > { %p1482_p1 = pnand %p1481_p0, %p1480_p13 }
  0x1c   : > { %p1483_p2 = pneg %p1482_p1 }
  0x1e   : > { %p1488_p4 = pnand %p1486_p3, %p1483_p2 }
  0x20   : > { %1491 = shalt.err (!%p1488_p4)
}
  0x21   : > { %s1492_s26 = scalar_lea.vmem %s310_s27, 2048  ;;  %p1500_p9 = scmp.lt.s32.totalorder %s310_s27, %s310_s27 }
  0x22   : > { %p1493_p7 = scmp.ne.s32.totalorder %s310_s27, %s1492_s26  ;;  %p1501_p6 = scmp.lt.s32.totalorder %s1492_s26, %s1492_s26 }
  0x24   : > { %p1495_p8 = pnand %p1493_p7, %p1481_p0  ;;  %p1502_p5 = por %p1501_p6, %p1500_p9 }
  0x26   : > { %p1496_p11 = pneg %p1495_p8 }
  0x28   : > { %p1503_p10 = pnand %p1502_p5, %p1496_p11 }
  0x2a   : > { %1506 = shalt.err (!%p1503_p10)
}
  0x2b   : > { %s1576_s29 = smov 64   ;;  %s1577_s30 = smov 4  }
  0x2c   : > { %1385 = dma.hbm_to_vmem [thread:$0]  (!%p1694_p12), %s1913_s8, 2048, %s310_s27, [#allocation3], %s1576_s29, %s1576_s29, %s1577_s30  }
  0x2d   : > { %p1925_p13 = scmp.ne.s32.totalorder %s1923_s25, 0 }
  0x2e   : > { %p1926_p1 = scmp.eq.s32.totalorder (!%p1925_p13), %s1658_s17, 0 }
  0x2f   : > { %364 = sbr.rel (%p1925_p13) target bundleno = 1218 (0x4c2), region = 60 }
  0x36   : > { %1552 = dma.done.wait (%p1926_p1), [#allocation3], 2048   ;;  %p1927_p0 = pmov %p1926_p1 }
  0x37   : > { %s1243_s11 = sshll.u32 %s1658_s17, 2  ;;  %v1578_v0 = vmov 0   ;;  %s1928_s1 = sld [smem:[#allocation9_spill]]  ;;  %v459_v1 = vld [vmem:[%s1909_s4] sm:$0xff]  ;;  %vm482_vm0 = vcmask 1043456   ;;  %vm475_vm1 = vcmask 64512  }
  0x38   : > { %1554 = vsyncadd (%p1927_p0), [#allocation3], 4294965248  ;;  %521 = vmatprep.mubr.bf16.mxu0 %v1578_v0  ;;  %p418_p5 = scmp.lt.s32.totalorder %s1243_s11, 7  ;;  %1431 = vset.pattern.permute.xlu0 %v1578_v0  ;;  %v1254_v2 = vcombine.high %v459_v1, %v459_v1  ;;  %v1253_v3 = vcombine.low %v459_v1, %v459_v1  ;;  %s1929_s0 = sld [smem:[#allocation8_spill]]  ;;  %vm554_vm2 = vcmask 261120  }
  0x39   : > { %1432 = vset.pattern.permute.xlu1 %v1578_v0  ;;  %v1439_v8 = vld [vmem:[%s1911_s6] ss:$8 sps:$4 sm:$0xff]   ;;  %v1441_v9 = vld [vmem:[%s1911_s6 + $0x4] ss:$8 sps:$4 sm:$0xff]   ;;  %v1442_v14 = vld [vmem:[%s1911_s6 + $0x10] ss:$8 sps:$4 sm:$0xff]  }
  0x3a   : > { %s1937_s11 = smov (!%p418_p5, %s1243_s11), 7  ;;  %1255 = vmatprep.subr.msk.bf16.mxu0 %vm482_vm0, %v1254_v2  ;;  %v484_v5 = vsel %vm482_vm0, %v1253_v3, 0  ;;  %v1444_v15 = vld [vmem:[%s1911_s6 + $0x14] ss:$8 sps:$4 sm:$0xff]   ;;  %v1447_v16 = vld [vmem:[%s1911_s6 + $0x24] ss:$8 sps:$4 sm:$0xff]  }
  0x3b   : > { %s1244_s27 = sshll.u32 %s1937_s11, 2  ;;  %490 = vmatpush1.bf16.msra.mxu0 %v484_v5  ;;  %s1248_s18 = sshll.u32 %s1937_s11, 3  ;;  %v1445_v19 = vld [vmem:[%s1911_s6 + $0x20] ss:$8 sps:$4 sm:$0xff]   ;;  %v1450_v20 = vld [vmem:[%s1911_s6 + $0x34] ss:$8 sps:$4 sm:$0xff]  }
  0x3c   : > { %775 = vmatprep.subr.bf16.mxu0 %v1441_v9  ;;  %v1448_v23 = vld [vmem:[%s1911_s6 + $0x30] ss:$8 sps:$4 sm:$0xff]   ;;  %v1453_v35 = vld [vmem:[%s1911_s6 + $0x44] ss:$8 sps:$4 sm:$0xff]   ;;  %v1451_v36 = vld [vmem:[%s1911_s6 + $0x40] ss:$8 sps:$4 sm:$0xff]  }
  0x3d   : > { %s427_s20 = scalar_lea.vmem %s1928_s1, %s1244_s27  ;;  %s433_s1 = scalar_lea.vmem %s1907_s2, %s1248_s18  ;;  %v1456_v37 = vld [vmem:[%s1911_s6 + $0x54] ss:$8 sps:$4 sm:$0xff]   ;;  %v1454_v38 = vld [vmem:[%s1911_s6 + $0x50] ss:$8 sps:$4 sm:$0xff]   ;;  %v1459_v39 = vld [vmem:[%s1911_s6 + $0x64] ss:$8 sps:$4 sm:$0xff]  }
  0x3e   : > { %v1435_v4 = vld [vmem:[%s427_s20] sm:$0xff]   ;;  %v1436_v6 = vld [vmem:[%s427_s20 + $0x8] sm:$0xff]   ;;  %s1735_s12 = scalar_lea.vmem %s1929_s0, %s1244_s27  ;;  %s439_s27 = scalar_lea.vmem %s1908_s3, %s1248_s18  ;;  %v453_v21 = vld [vmem:[%s433_s1 + $0x10] sm:$0xff] }
  0x3f   : > { %1256 = vmatmul.mubr.msk.bf16.vlgmr.msra.gmra.mrb[0].mxu0 %vm475_vm1, %v1435_v4  ;;  %v1738_v7 = vld [vmem:[%s1735_s12] sm:$0xff]   ;;  %v448_v12 = vld [vmem:[%s439_s27 + $0x8] sm:$0xff]  ;;  %v449_v17 = vld [vmem:[%s439_s27 + $0x10] sm:$0xff]  ;;  %s414_s0 = sand.u32 1, %s1565_s14   ;;  %p1930_p9 = scmp.ne.s32.totalorder %s1921_s23, 0 }
  0x40   : > { %531 = vmatprep.mubr.bf16.mxu0 %v1578_v0  ;;  %1364 = vmatprep.mubr.msk.bf16.mxu1 %vm554_vm2, %v1738_v7  ;;  %v447_v10 = vld [vmem:[%s439_s27] sm:$0xff]  ;;  %v452_v13 = vld [vmem:[%s433_s1 + $0x8] sm:$0xff]  ;;  %v450_v18 = vld [vmem:[%s439_s27 + $0x18] sm:$0xff]  ;;  %s1242_s30 = sshll.u32 %s414_s0, 4  ;;  %s1864_s21 = scalar_lea.sflag [#allocation4], %s414_s0 }
  0x41   : > { %v451_v11 = vld [vmem:[%s433_s1] sm:$0xff]  ;;  %612 = vperm.xlu0 %1431, %v447_v10   ;;  %776 = vmatpush1.bf16.msra.mxu0 %v1439_v8  ;;  %v454_v22 = vld [vmem:[%s433_s1 + $0x18] sm:$0xff]  ;;  %v1773_v34 = vld [vmem:[%s1735_s12 + $0x8] sm:$0xff]   ;;  %s416_s11 = scalar_lea.vmem [#allocation5], %s1242_s30  ;;  %s1312_s1 = sshll.u32 %s1658_s17, 8 }
  0x42   : > { %651 = vperm.xlu1 %1432, %v451_v11   ;;  %777 = vmatprep.subr.bf16.mxu0 %v1444_v15  ;;  %v1457_v40 = vld [vmem:[%s1911_s6 + $0x60] ss:$8 sps:$4 sm:$0xff]   ;;  %v1462_v41 = vld [vmem:[%s1911_s6 + $0x74] ss:$8 sps:$4 sm:$0xff]   ;;  %v1460_v42 = vld [vmem:[%s1911_s6 + $0x70] ss:$8 sps:$4 sm:$0xff]   ;;  %s1862_s20 = scalar_lea.hbm %s1915_s10, %s1312_s1 }
  0x43   : > { %v1262_v52 = vld [vmem:[%s1910_s5] ss:$0 sm:$0xff]  ;;  %s1126_s25 = sshll.u32 %s416_s11, 4  ;;  %s1579_s17 = smov [#allocation5]   ;;  %s1857_s25 = int_to_ptr.vmem [resolvable:$true] %s1126_s25 }
  0x44   : > { %s1507_s26 = scalar_lea.vmem %s1857_s25, 256  ;;  %s1511_s12 = sshll.u32 %s1579_s17, 4  ;;  %s1512_s12 = int_to_ptr.vmem [resolvable:$false] %s1511_s12 }
  0x45   : > { %617 = vperm.xlu0 %1431, %v448_v12   ;;  %778 = vmatpush1.bf16.msra.mxu0 %v1442_v14  ;;  %p1508_p6 = scmp.ne.s32.totalorder %s1857_s25, %s1507_s26  ;;  %s1513_s18 = scalar_lea.vmem %s1512_s12, 512 }
  0x46   : > { %656 = vperm.xlu1 %1432, %v452_v13   ;;  %779 = vmatprep.subr.bf16.mxu0 %v1447_v16  ;;  %v1463_v16 = vld [vmem:[#allocation2 + $0x40] sm:$0xff]   ;;  %p1514_p2 = scmp.lt.s32.totalorder %s1857_s25, %s1512_s12  ;;  %p1515_p3 = scmp.lt.s32.totalorder %s1513_s18, %s1507_s26 }
  0x47   : > { %1257 = vmatmul.mubr.msk.bf16.gmra.mrb[4].mxu0 %vm475_vm1, %v1436_v6  ;;  %p1509_p10 = pnand %p1508_p6, %p1930_p9 }
  0x48   : > { %807 = vmatprep.mubr.bf16.mxu0 %v1578_v0  ;;  %p1516_p4 = por %p1515_p3, %p1514_p2 }
  0x49   : > { %622 = vperm.xlu0 %1431, %v449_v17   ;;  %780 = vmatpush1.bf16.msra.mxu0 %v1445_v19  ;;  %v1464_v17 = vld [vmem:[#allocation2] sm:$0xff]   ;;  %v1466_v19 = vld [vmem:[#allocation2 + $0x8] sm:$0xff]   ;;  %p1510_p12 = pneg %p1509_p10 }
  0x4a   : > { %627 = vperm.xlu1 %1432, %v450_v18   ;;  %781 = vmatprep.subr.bf16.mxu0 %v1450_v20  ;;  %v1465_v18 = vld [vmem:[#allocation2 + $0x48] sm:$0xff]   ;;  %v1467_v20 = vld [vmem:[#allocation2 + $0x50] sm:$0xff]  }
  0x4b   : > { %p1517_p7 = pnand %p1516_p4, %p1510_p12 }
  0x4d   : > { %661 = vperm.xlu0 %1431, %v453_v21   ;;  %782 = vmatpush1.bf16.msra.mxu0 %v1448_v23  ;;  %v1468_v21 = vld [vmem:[#allocation2 + $0x10] sm:$0xff]   ;;  %v1470_v23 = vld [vmem:[#allocation2 + $0x18] sm:$0xff]  }
  0x4e   : > { %666 = vperm.xlu1 %1432, %v454_v22   ;;  %783 = vmatprep.subr.bf16.mxu0 %v1453_v35  ;;  %v1469_v22 = vld [vmem:[#allocation2 + $0x58] sm:$0xff]   ;;  %v1473_v35 = vld [vmem:[#allocation2 + $0x68] sm:$0xff]  }
  0x51   : > { %784 = vmatpush1.bf16.msra.mxu0 %v1451_v36  ;;  %v1474_v36 = vld [vmem:[#allocation2 + $0x28] sm:$0xff]  }
  0x52   : > { %785 = vmatprep.subr.bf16.mxu0 %v1456_v37  ;;  %v1475_v37 = vld [vmem:[#allocation2 + $0x70] sm:$0xff]  }
  0x55   : > { %786 = vmatpush1.bf16.msra.mxu0 %v1454_v38  ;;  %v1476_v38 = vld [vmem:[#allocation2 + $0x30] sm:$0xff]  }
  0x56   : > { %787 = vmatprep.subr.bf16.mxu0 %v1459_v39  ;;  %v1477_v39 = vld [vmem:[#allocation2 + $0x78] sm:$0xff]  }
  0x59   : > { %788 = vmatpush1.bf16.msra.mxu0 %v1457_v40  ;;  %v1478_v40 = vld [vmem:[#allocation2 + $0x38] sm:$0xff]  }
  0x5a   : > { %789 = vmatprep.subr.bf16.mxu0 %v1462_v41 }
  0x5d   : > { %790 = vmatpush1.bf16.msra.mxu0 %v1460_v42 }
  0xc0   : > { %v1801_v43 = vpop.permute.xlu0 %612 }
  0xc1   : > { %v1803_v44 = vpop.permute.xlu1 %651 }
  0xc4   : > { %v1805_v45 = vpop.permute.xlu0 %617 }
  0xc5   : > { %v1807_v46 = vpop.permute.xlu1 %656 }
  0xc8   : > { %v1809_v47 = vpop.permute.xlu0 %622 }
  0xc9   : > { %v1812_v51 = vpop.permute.xlu1 %627 }
  0xcc   : > { %v1820_v62 = vpop.permute.xlu0 %661 }
  0xcd   : > { %v1824_v5 = vpop.permute.xlu1 %666 }
 0x112   : > { %v523_v24 = vpop.f32.mrb[0].mxu0 }
 0x113   : > { %v525_v25 = vpop.f32.mrb[1].mxu0 }
 0x114   : > { %v527_v26 = vpop.f32.mrb[2].mxu0 }
 0x115   : > { %v542_v27 = vpack.c.bf16 %v527_v26, %v523_v24  ;;  %v529_v28 = vpop.f32.mrb[3].mxu0 }
 0x117   : > { %1360 = vmatprep.subr.bf16.mxu1 %v542_v27 }
 0x118   : > { %1361 = vmatpush3.bf16.msra.mxu1 %v542_v27 }
 0x11a   : > { %v533_v29 = vpop.f32.mrb[4].mxu0 }
 0x11b   : > { %v535_v30 = vpop.f32.mrb[5].mxu0 }
 0x11c   : > { %v537_v31 = vpop.f32.mrb[6].mxu0 }
 0x11d   : > { %v543_v32 = vpack.c.bf16 %v537_v31, %v533_v29  ;;  %v539_v33 = vpop.f32.mrb[7].mxu0 }
 0x11f   : > { %1362 = vmatprep.subr.bf16.mxu1 %v543_v32 }
 0x120   : > { %1363 = vmatpush3.bf16.msra.mxu1 %v543_v32  ;;  %v1471_v32 = vld [vmem:[#allocation2 + $0x60] sm:$0xff]  }
 0x121   : > { %1332 = vmatprep.subr.bf16.mxu1 %v1463_v16 }
 0x123   : > { %1365 = vmatmul.mubr.msk.bf16.vlgmr.msra.gmra.mrb[0].mxu1 %vm554_vm2, %v1773_v34 }
 0x124   : > { %1333 = vmatpush3.bf16.msra.mxu1 %v1464_v17 }
 0x125   : > { %1334 = vmatprep.subr.bf16.mxu1 %v1465_v18 }
 0x128   : > { %1335 = vmatpush3.bf16.msra.mxu1 %v1466_v19 }
 0x129   : > { %1336 = vmatprep.subr.bf16.mxu1 %v1467_v20 }
 0x12c   : > { %1337 = vmatpush3.bf16.msra.mxu1 %v1468_v21 }
 0x12d   : > { %1338 = vmatprep.subr.bf16.mxu1 %v1469_v22 }
 0x130   : > { %1339 = vmatpush3.bf16.msra.mxu1 %v1470_v23 }
 0x131   : > { %1340 = vmatprep.subr.bf16.mxu1 %v1471_v32 }
 0x1f6   : > { %v1366_v48 = vpop.f32.mrb[0].mxu1 }
 0x1f7   : > { %v632_v49 = vmul.f32 %v1366_v48, %v1809_v47  ;;  %v595_v50 = vpop.f32.mrb[1].mxu1  ;;  %v1281_v48 = vld [vmem:[%s1912_s7] ss:$0 sm:$0xff] }
 0x1f8   : > { %v630_v53 = vmul.f32 %v1801_v43, %v595_v50  ;;  %v1367_v54 = vpop.f32.mrb[2].mxu1 }
 0x1f9   : > { %v636_v55 = vadd.f32 %v632_v49, %v535_v30  ;;  %v633_v56 = vmul.f32 %v1367_v54, %v1812_v51  ;;  %v598_v57 = vpop.f32.mrb[3].mxu1 }
 0x1fa   : > { %v634_v58 = vadd.f32 %v630_v53, %v525_v25  ;;  %v631_v59 = vmul.f32 %v1805_v45, %v598_v57 }
 0x1fb   : > { %v647_v60 = vadd.f32 %v1262_v52, %v636_v55  ;;  %v637_v61 = vadd.f32 %v633_v56, %v539_v33  ;;  %v1472_v33 = vld [vmem:[#allocation2 + $0x20] sm:$0xff]  }
 0x1fc   : > { %v645_v63 = vadd.f32 %v1262_v52, %v634_v58  ;;  %v635_v1 = vadd.f32 %v631_v59, %v529_v28  ;;  %1341 = vmatpush3.bf16.msra.mxu1 %v1472_v33 }
 0x1fd   : > { %v648_v2 = vadd.f32 %v1262_v52, %v637_v61  ;;  %v671_v3 = vmul.f32 %v1820_v62, %v647_v60  ;;  %1342 = vmatprep.subr.bf16.mxu1 %v1473_v35 }
 0x1fe   : > { %v669_v4 = vmul.f32 %v1803_v44, %v645_v63  ;;  %v646_v6 = vadd.f32 %v1262_v52, %v635_v1 }
 0x1ff   : > { %v672_v8 = vmul.f32 %v1824_v5, %v648_v2  ;;  %v675_v10 = vmax.f32 %v671_v3, 0.0 }
 0x200   : > { %v670_v9 = vmul.f32 %v1807_v46, %v646_v6  ;;  %v673_v12 = vmax.f32 %v669_v4, 0.0  ;;  %1343 = vmatpush3.bf16.msra.mxu1 %v1474_v36 }
 0x201   : > { %v676_v11 = vmax.f32 %v672_v8, 0.0  ;;  %1344 = vmatprep.subr.bf16.mxu1 %v1475_v37 }
 0x202   : > { %v674_v13 = vmax.f32 %v670_v9, 0.0 }
 0x203   : > { %v1828_v14 = vpack.c.bf16 %v676_v11, %v675_v10 }
 0x204   : > { %v1830_v15 = vpack.c.bf16 %v674_v13, %v673_v12  ;;  %1345 = vmatpush3.bf16.msra.mxu1 %v1476_v38 }
 0x205   : > { %1346 = vmatprep.subr.bf16.mxu1 %v1477_v39 }
 0x206   : > { %808 = vmatmul.mubr.bf16.vlgmr.msra.gmra.mrb[8].mxu0 %v1830_v15 }
 0x207   : > { %817 = vmatprep.mubr.bf16.mxu0 %v1578_v0 }
 0x208   : > { %1347 = vmatpush3.bf16.msra.mxu1 %v1478_v40 }
 0x20e   : > { %818 = vmatmul.mubr.bf16.gmra.mrb[12].mxu0 %v1828_v14 }
 0x20f   : > { %1372 = vmatprep.mubr.msk.bf16.mxu0 %vm554_vm2, %v1738_v7 }
 0x2d9   : > { %v809_v0 = vpop.f32.mrb[8].mxu0 }
 0x2da   : > { %v811_v24 = vpop.f32.mrb[9].mxu0 }
 0x2db   : > { %v813_v25 = vpop.f32.mrb[10].mxu0 }
 0x2dc   : > { %v828_v7 = vpack.c.bf16 %v813_v25, %v809_v0  ;;  %v815_v26 = vpop.f32.mrb[11].mxu0 }
 0x2de   : > { %1368 = vmatprep.subr.bf16.mxu0 %v828_v7 }
 0x2df   : > { %1369 = vmatpush3.bf16.msra.mxu0 %v828_v7 }
 0x2e1   : > { %v819_v27 = vpop.f32.mrb[12].mxu0 }
 0x2e2   : > { %v821_v28 = vpop.f32.mrb[13].mxu0 }
 0x2e3   : > { %v823_v29 = vpop.f32.mrb[14].mxu0 }
 0x2e4   : > { %v829_v30 = vpack.c.bf16 %v823_v29, %v819_v27  ;;  %v825_v31 = vpop.f32.mrb[15].mxu0 }
 0x2e6   : > { %1370 = vmatprep.subr.bf16.mxu0 %v829_v30 }
 0x2e7   : > { %1371 = vmatpush3.bf16.msra.mxu0 %v829_v30 }
 0x2ea   : > { %1373 = vmatmul.mubr.msk.bf16.vlgmr.msra.gmra.mrb[16].mxu0 %vm554_vm2, %v1773_v34 }
 0x3bd   : > { %v1374_v41 = vpop.f32.mrb[16].mxu0 }
 0x3be   : > { %v881_v42 = vmul.f32 %v1374_v41, %v1809_v47  ;;  %v864_v34 = vpop.f32.mrb[17].mxu0 }
 0x3bf   : > { %v879_v49 = vmul.f32 %v864_v34, %v1801_v43  ;;  %v1375_v50 = vpop.f32.mrb[18].mxu0 }
 0x3c0   : > { %v885_v52 = vadd.f32 %v881_v42, %v821_v28  ;;  %v882_v53 = vmul.f32 %v1375_v50, %v1812_v51  ;;  %v867_v54 = vpop.f32.mrb[19].mxu0 }
 0x3c1   : > { %v883_v55 = vadd.f32 %v879_v49, %v811_v24  ;;  %v880_v56 = vmul.f32 %v867_v54, %v1805_v45 }
 0x3c2   : > { %v896_v57 = vadd.f32 %v1281_v48, %v885_v52  ;;  %v886_v58 = vadd.f32 %v882_v53, %v825_v31 }
 0x3c3   : > { %v894_v59 = vadd.f32 %v1281_v48, %v883_v55  ;;  %v884_v60 = vadd.f32 %v880_v56, %v815_v26 }
 0x3c4   : > { %v897_v47 = vadd.f32 %v1281_v48, %v886_v58  ;;  %v900_v61 = vmul.f32 %v896_v57, %v1820_v62 }
 0x3c5   : > { %v895_v63 = vadd.f32 %v1281_v48, %v884_v60  ;;  %v898_v1 = vmul.f32 %v894_v59, %v1803_v44 }
 0x3c6   : > { %v901_v43 = vmul.f32 %v897_v47, %v1824_v5  ;;  %v904_v51 = vmax.f32 %v900_v61, 0.0 }
 0x3c7   : > { %v899_v2 = vmul.f32 %v895_v63, %v1807_v46  ;;  %v902_v4 = vmax.f32 %v898_v1, 0.0  ;;  %v1282_v46 = vld [vmem:[%s1914_s9] ss:$0 sm:$0xff] }
 0x3c8   : > { %v905_v3 = vmax.f32 %v901_v43, 0.0 }
 0x3c9   : > { %v903_v6 = vmax.f32 %v899_v2, 0.0 }
 0x3ca   : > { %v907_v45 = vpack.c.bf16 %v905_v3, %v904_v51 }
 0x3cb   : > { %v906_v8 = vpack.c.bf16 %v903_v6, %v902_v4 }
 0x3cd   : > { %1075 = vmatprep.mubr.bf16.mxu1 %v906_v8 }
 0x3ce   : > { %1076 = vmatmul.mubr.bf16.vlgmr.msra.gmra.mrb[4].mxu1 %v1830_v15 }
 0x3cf   : > { %1083 = vmatprep.mubr.bf16.mxu1 %v907_v45 }
 0x3d6   : > { %1084 = vmatmul.mubr.bf16.gmra.mrb[8].mxu1 %v1828_v14 }
 0x4a1   : > { %v1348_v62 = vpop.f32.mrb[4].mxu1 }
 0x4a2   : > { %v1349_v9 = vpop.f32.mrb[5].mxu1 }
 0x4a3   : > { %v1350_v44 = vadd.f32 %v1349_v9, %v1348_v62  ;;  %v1351_v10 = vpop.f32.mrb[6].mxu1 }
 0x4a4   : > { %v1352_v5 = vpop.f32.mrb[7].mxu1 }
 0x4a5   : > { %v1353_v11 = vadd.f32 %v1352_v5, %v1351_v10  ;;  %v1078_v12 = vadd.f32 %v1350_v44, %v1282_v46 }
 0x4a7   : > { %v1081_v13 = vadd.f32 %v1353_v11, %v1282_v46 }
 0x4a9   : > { %v1316_v16 = vpack.c.bf16 %v1081_v13, %v1078_v12  ;;  %v1354_v15 = vpop.f32.mrb[8].mxu1 }
 0x4aa   : > { %v1355_v17 = vpop.f32.mrb[9].mxu1 }
 0x4ab   : > { %1317 = vst [vmem:[%s416_s11] sm:$0xff] %v1316_v16   ;;  %v1356_v14 = vadd.f32 %v1355_v17, %v1354_v15  ;;  %v1357_v18 = vpop.f32.mrb[10].mxu1 }
 0x4ac   : > { %v1358_v19 = vpop.f32.mrb[11].mxu1 }
 0x4ad   : > { %v1359_v20 = vadd.f32 %v1358_v19, %v1357_v18  ;;  %v1086_v21 = vadd.f32 %v1356_v14, %v1282_v46 }
 0x4af   : > { %v1089_v22 = vadd.f32 %v1359_v20, %v1282_v46 }
 0x4b1   : > { %v1321_v23 = vpack.c.bf16 %v1089_v22, %v1086_v21 }
 0x4b3   : > { %1323 = vst [vmem:[%s416_s11 + $0x8] sm:$0xff] %v1321_v23  }
 0x4b4   : > { %1520 = shalt.err (!%p1517_p7)
}
 0x4b5   : > { %s1521_s0 = scalar_lea.hbm %s1862_s20, 256  ;;  %s1525_s11 = scalar_lea.hbm %s1915_s10, 512 }
 0x4b6   : > { %p1522_p8 = scmp.ne.s32.totalorder %s1862_s20, %s1521_s0  ;;  %p1526_p1 = scmp.lt.u32.totalorder %s1862_s20, %s1915_s10 }
 0x4b7   : > { %p1527_p0 = scmp.lt.u32.totalorder %s1525_s11, %s1521_s0  ;;  %p1529_p6 = scmp.lt.u32.totalorder %s1521_s0, %s1862_s20 }
 0x4b8   : > { %p1523_p11 = pnand %p1522_p8, %p1930_p9 }
 0x4b9   : > { %p1528_p5 = por %p1527_p0, %p1526_p1 }
 0x4ba   : > { %p1524_p13 = pneg %p1523_p11 }
 0x4bb   : > { %p1530_p10 = por %p1529_p6, %p1528_p5 }
 0x4bd   : > { %p1531_p12 = pnand %p1530_p10, %p1524_p13 }
 0x4bf   : > { %1534 = shalt.err (!%p1531_p12)
}
 0x4c0   : > { %s1580_s28 = smov 64   ;;  %s1581_s26 = smov 4  }
 0x4c1   : > { %1380 = dma.vmem_to_hbm [thread:$0]  (%p1930_p9), %s1857_s25, 256, %s1862_s20, %s1864_s21, %s1580_s28, %s1580_s28, %s1581_s26  }
 0x4c2 PF: > { %p1392_p2 = scmp.ge.s32.totalorder %s1573_s16, 2  ;;  %s1141_s17 = sand.u32 1, %s1561_s13  }
 0x4c3   : > { %p1931_p3 = scmp.ne.s32.totalorder %s1922_s24, 0  ;;  %s1142_s12 = scalar_lea.sflag [#allocation4], %s1141_s17 }
 0x4c5   : > { %p1387_p4 = pnand %p1392_p2, %p1931_p3 }
 0x4c7   : > { %1556 = dma.done.wait (!%p1387_p4), %s1142_s12, 256  }
 0x4c8   : > { %1558 = vsyncadd (!%p1387_p4), %s1142_s12, 4294967040  ;;  %p21_p7 = scmp.ge.s32.totalorder %s1662_s19, 4   ;;  %s1932_s13 = smov %s1565_s14 }
 0x4c9   : > { %s1933_s14 = smov %s1569_s15  ;;  %s1934_s15 = smov %s1673_s22 }
 0x4ca   : > { %s1935_s16 = smov %s1662_s19  ;;  %23 = sbr.rel (!%p21_p7) target bundleno = 7 (0x7), region = 109 }
 0x4d1   :  { %1147 = vsyncpa [#allocation3], 1 }
 0x4d2   :  { %1149 = vsyncpa [#allocation3 + $0x1], 1 }
 0x4d3   :  { %1150 = vsyncpa [#allocation4], 1 }
 0x4d4   :  { %1152 = vsyncpa [#allocation4 + $0x1], 1 }

</bundles_post_ra>
